<compile_context>
chip_gen: v5e
topology: v5e:2x2
jax: 0.10.0
libtpu: 0.0.40
codegen_flags: <defaults>
</compile_context>

<pallas_src>
import functools

import jax
import jax.numpy as jnp
from jax.experimental import pallas as pl
from jax.experimental.pallas import tpu as pltpu


# -----------------------------------------------------------------------------
# Fused encoder-body kernel
# -----------------------------------------------------------------------------
def _fused_encoder_kernel(x_ref, bstem_ref, wpw_ref, bpw_ref,
                          w1_ref, b1_ref, w2_ref, b2_ref,
                          o_ref, acc_ref, *,
                          s_total, ts, n_s, fold, d, ragged):
    """Per (batch, spatial-tile) grid step:
         x -> stem bias + ReLU (bf16) -> block-diag pointwise conv (MXU, f32 acc)
           -> + bias, ReLU -> running GAP sum into acc (1, fold*D).
       On the last spatial tile of each batch:
         fold 4 lane-groups -> GAP finalize -> Linear -> ReLU -> Linear
           -> L2 normalize -> write (1, P).
    """
    s = pl.program_id(1)

    @pl.when(s == 0)
    def _():
        acc_ref[...] = jnp.zeros_like(acc_ref)

    # Stem bias + ReLU, bf16 (bf16 VALU on v6e/v7x; widened transparently on v5e).
    x = jnp.maximum(x_ref[...] + bstem_ref[...], 0)                      # (ts, fold*Cs)

    # Lane/MXU-dense pointwise conv: K = fold*Cs, N = fold*D, f32 accumulation.
    h = jnp.dot(x, wpw_ref[...], preferred_element_type=jnp.float32)     # (ts, fold*D)
    h = jnp.maximum(h + bpw_ref[...], 0.0)

    if ragged:
        # Only the LAST spatial tile has pad rows -> mask only there (VALU saving).
        last_valid = s_total - (n_s - 1) * ts * fold   # static Python int

        @pl.when(s == n_s - 1)
        def _():
            row = jax.lax.broadcasted_iota(jnp.int32, h.shape, 0)
            grp = jax.lax.broadcasted_iota(jnp.int32, h.shape, 1) // d
            hm = jnp.where(row * fold + grp < last_valid, h, 0.0)
            acc_ref[...] += jnp.sum(hm, axis=0, keepdims=True)

        @pl.when(s != n_s - 1)
        def _():
            acc_ref[...] += jnp.sum(h, axis=0, keepdims=True)
    else:
        acc_ref[...] += jnp.sum(h, axis=0, keepdims=True)

    @pl.when(s == n_s - 1)
    def _():
        acc = acc_ref[...]                               # (1, fold*D) f32
        feats = acc[:, :d]
        for g in range(1, fold):                         # fold the 4 lane-groups once
            feats = feats + acc[:, g * d:(g + 1) * d]
        feats = feats * jnp.float32(1.0 / s_total)       # global average pool

        # Projection MLP: Linear(D,D) -> ReLU -> Linear(D,P)
        h1 = jnp.dot(feats, w1_ref[...], preferred_element_type=jnp.float32) + b1_ref[...]
        h1 = jnp.maximum(h1, 0.0)
        z = jnp.dot(h1, w2_ref[...], preferred_element_type=jnp.float32) + b2_ref[...]

        # F.normalize(z, dim=1): z / max(||z||, 1e-12)
        ss = jnp.sum(z * z, axis=1, keepdims=True)
        inv = jax.lax.rsqrt(jnp.maximum(ss, jnp.float32(1e-24)))
        o_ref[...] = (z * inv).astype(o_ref.dtype)


# -----------------------------------------------------------------------------
# Forward
# -----------------------------------------------------------------------------
def cardiac_mri_encoder_forward(video, params, *, ts_max=8192):
    """video: [B, C, T, H, W] float32 (PyTorch NCDHW)."""
    B, C, T, H, W = video.shape

    # --- 3D conv stem (3x3x3, stride (1,2,2), pad 1), emitted directly in bf16:
    #     one bf16 HBM write of the big activation, read once by the Pallas kernel.
    x = jax.lax.conv_general_dilated(
        video.astype(jnp.bfloat16), params["w_stem"].astype(jnp.bfloat16),
        window_strides=(1, 2, 2),
        padding=((1, 1), (1, 1), (1, 1)),
        dimension_numbers=("NCDHW", "DHWIO", "NDHWC"),
    )                                                     # [B, To, Ho, Wo, Cs] bf16
    _, To, Ho, Wo, Cs = x.shape
    S = To * Ho * Wo

    D = params["w_pw"].shape[1]        # video_dim
    P = params["w_proj2"].shape[1]     # proj_dim

    # Fold `fold` spatial rows into the lane dim (free row-major reshape) so the
    # pointwise matmul and all VPU work are 128-lane dense.
    fold = 128 // Cs if (Cs <= 128 and 128 % Cs == 0) else 1
    S4 = -(-S // fold)
    x = x.reshape(B, S, Cs)
    if S4 * fold != S:                      # tiny pad, only when S % fold != 0
        x = jnp.pad(x, ((0, 0), (0, S4 * fold - S), (0, 0)))
    x = x.reshape(B, S4, fold * Cs)

    ts_max = max(8, ts_max - ts_max % 8)
    ts = S4 if S4 <= ts_max else ts_max     # full-extent block or multiple of 8
    n_s = pl.cdiv(S4, ts)
    ragged = (n_s * ts * fold) != S         # pad rows exist only in the last tile

    # Block-diagonal pointwise weight (fold copies of w_pw on the diagonal), bf16.
    w_pw_bd = jnp.kron(jnp.eye(fold, dtype=jnp.bfloat16),
                       params["w_pw"].astype(jnp.bfloat16))          # (fold*Cs, fold*D)
    b_stem_t = jnp.tile(params["b_stem"].astype(jnp.bfloat16), fold).reshape(1, fold * Cs)
    b_pw_t = jnp.tile(params["b_pw"].astype(jnp.float32), fold).reshape(1, fold * D)

    kernel = functools.partial(_fused_encoder_kernel,
                               s_total=S, ts=ts, n_s=n_s, fold=fold, d=D, ragged=ragged)

    out = pl.pallas_call(
        kernel,
        out_shape=jax.ShapeDtypeStruct((B, 1, P), jnp.float32),
        grid_spec=pltpu.PrefetchScalarGridSpec(
            num_scalar_prefetch=0,
            grid=(B, n_s),
            in_specs=[
                pl.BlockSpec((None, ts, fold * Cs), lambda b, s: (b, s, 0)),  # folded act
                pl.BlockSpec((1, fold * Cs), lambda b, s: (0, 0)),            # b_stem (bf16)
                pl.BlockSpec((fold * Cs, fold * D), lambda b, s: (0, 0)),     # block-diag w_pw
                pl.BlockSpec((1, fold * D), lambda b, s: (0, 0)),             # b_pw tiled
                pl.BlockSpec((D, D), lambda b, s: (0, 0)),                    # w_proj1
                pl.BlockSpec((1, D), lambda b, s: (0, 0)),                    # b_proj1
                pl.BlockSpec((D, P), lambda b, s: (0, 0)),                    # w_proj2
                pl.BlockSpec((1, P), lambda b, s: (0, 0)),                    # b_proj2
            ],
            out_specs=pl.BlockSpec((None, 1, P), lambda b, s: (b, 0, 0)),
            scratch_shapes=[pltpu.VMEM((1, fold * D), jnp.float32)],          # GAP acc
        ),
        compiler_params=pltpu.CompilerParams(
            dimension_semantics=("parallel", "arbitrary")),
    )(
        x,
        b_stem_t,
        w_pw_bd,
        b_pw_t,
        params["w_proj1"].astype(jnp.float32),
        params["b_proj1"].reshape(1, D).astype(jnp.float32),
        params["w_proj2"].astype(jnp.float32),
        params["b_proj2"].reshape(1, P).astype(jnp.float32),
    )
    return out.reshape(B, P)


def init_params(key, in_channels=3, stem_out=32, video_dim=64, proj_dim=32):
    ks = jax.random.split(key, 8)
    s = 0.05
    return {
        # Stem conv weight in DHWIO layout (kd, kh, kw, C_in, C_out).
        "w_stem": s * jax.random.normal(ks[0], (3, 3, 3, in_channels, stem_out), jnp.float32),
        "b_stem": s * jax.random.normal(ks[1], (stem_out,), jnp.float32),
        "w_pw":   s * jax.random.normal(ks[2], (stem_out, video_dim), jnp.float32),
        "b_pw":   s * jax.random.normal(ks[3], (video_dim,), jnp.float32),
        "w_proj1": s * jax.random.normal(ks[4], (video_dim, video_dim), jnp.float32),
        "b_proj1": s * jax.random.normal(ks[5], (video_dim,), jnp.float32),
        "w_proj2": s * jax.random.normal(ks[6], (video_dim, proj_dim), jnp.float32),
        "b_proj2": s * jax.random.normal(ks[7], (proj_dim,), jnp.float32),
    }


def _reference(video, params):
    """Pure-JAX reference of the same (bf16-stem) computation, for a loose check."""
    xb = jax.lax.conv_general_dilated(
        video.astype(jnp.bfloat16), params["w_stem"].astype(jnp.bfloat16),
        window_strides=(1, 2, 2), padding=((1, 1), (1, 1), (1, 1)),
        dimension_numbers=("NCDHW", "DHWIO", "NDHWC"))
    B = video.shape[0]
    Cs = xb.shape[-1]
    xb = xb.reshape(B, -1, Cs).astype(jnp.float32)
    a = jnp.maximum(xb + params["b_stem"], 0.0)
    h = jnp.einsum("bsc,cd->bsd", a.astype(jnp.bfloat16),
                   params["w_pw"].astype(jnp.bfloat16),
                   preferred_element_type=jnp.float32) + params["b_pw"]
    h = jnp.maximum(h, 0.0)
    feats = h.mean(axis=1)
    h1 = jnp.maximum(feats @ params["w_proj1"] + params["b_proj1"], 0.0)
    z = h1 @ params["w_proj2"] + params["b_proj2"]
    return z / jnp.maximum(jnp.linalg.norm(z, axis=1, keepdims=True), 1e-12)


if __name__ == "__main__":
    key = jax.random.PRNGKey(0)
    k_in, k_par = jax.random.split(key)

    # Small video: batch=2, channels=3, frames=8, spatial=16x16 (NCDHW).
    video = jax.random.normal(k_in, (2, 3, 8, 16, 16), jnp.float32)
    params = init_params(k_par)

    out = cardiac_mri_encoder_forward(video, params)
    out = jax.block_until_ready(out)

    assert out.shape == (2, 32), out.shape
    # L2 norm along dim=1 should be ~1 after F.normalize semantics.
    norms = jnp.linalg.norm(out, axis=1)
    assert bool(jnp.all(jnp.abs(norms - 1.0) < 1e-4)), norms
    # Loose check against a pure-JAX reference (bf16 activation path -> loose tol).
    ref = jax.block_until_ready(_reference(video, params))
    assert bool(jnp.all(jnp.abs(out - ref) < 5e-2)), jnp.max(jnp.abs(out - ref))
    print("KERNEL_OK")
</pallas_src>

<mosaic_0001>
module attributes {stable_mosaic.version = 11 : i64} {
  func.func @_fused_encoder_kernel(%arg0: i32, %arg1: i32, %arg2: memref<1x128x128xbf16, #tpu.memory_space<vmem>>, %arg3: memref<1x128xbf16, #tpu.memory_space<vmem>>, %arg4: memref<128x256xbf16, #tpu.memory_space<vmem>>, %arg5: memref<1x256xf32, #tpu.memory_space<vmem>>, %arg6: memref<64x64xf32, #tpu.memory_space<vmem>>, %arg7: memref<1x64xf32, #tpu.memory_space<vmem>>, %arg8: memref<64x32xf32, #tpu.memory_space<vmem>>, %arg9: memref<1x32xf32, #tpu.memory_space<vmem>>, %arg10: memref<1x1x32xf32, #tpu.memory_space<vmem>>, %arg11: memref<1x256xf32, #tpu.memory_space<vmem>>) attributes {dimension_semantics = [#tpu.dimension_semantics<parallel>, #tpu.dimension_semantics<arbitrary>], iteration_bounds = array<i64: 2, 1>, scalar_prefetch = 0 : i64, scratch_operands = 1 : i64, tpu.core_type = #tpu.core_type<tc>, window_params = [{transform_indices = @transform_0, window_bounds = array<i64: 1, 128, 128>}, {pipeline_mode = #tpu.pipeline_mode<synchronous>, transform_indices = @transform_1, window_bounds = array<i64: 1, 128>}, {pipeline_mode = #tpu.pipeline_mode<synchronous>, transform_indices = @transform_2, window_bounds = array<i64: 128, 256>}, {pipeline_mode = #tpu.pipeline_mode<synchronous>, transform_indices = @transform_3, window_bounds = array<i64: 1, 256>}, {pipeline_mode = #tpu.pipeline_mode<synchronous>, transform_indices = @transform_4, window_bounds = array<i64: 64, 64>}, {pipeline_mode = #tpu.pipeline_mode<synchronous>, transform_indices = @transform_5, window_bounds = array<i64: 1, 64>}, {pipeline_mode = #tpu.pipeline_mode<synchronous>, transform_indices = @transform_6, window_bounds = array<i64: 64, 32>}, {pipeline_mode = #tpu.pipeline_mode<synchronous>, transform_indices = @transform_7, window_bounds = array<i64: 1, 32>}, {transform_indices = @transform_8, window_bounds = array<i64: 1, 1, 32>}]} {
    %c0_i32 = arith.constant 0 : i32
    %0 = arith.cmpi eq, %arg1, %c0_i32 : i32
    %1 = arith.extui %0 : i1 to i32
    %c0_i32_0 = arith.constant 0 : i32
    %2 = arith.cmpi ne, %1, %c0_i32_0 : i32
    scf.if %2 {
      %cst_18 = arith.constant 0.000000e+00 : f32
      %25 = vector.broadcast %cst_18 : f32 to vector<1x256xf32>
      %c0_19 = arith.constant 0 : index
      %c0_20 = arith.constant 0 : index
      %26 = vector.load %arg11[%c0_19, %c0_20] : memref<1x256xf32, #tpu.memory_space<vmem>>, vector<1x256xf32>
      tpu.vector_store %arg11[%c0_19, %c0_20], %25 {strides = array<i32>} : memref<1x256xf32, #tpu.memory_space<vmem>>, vector<1x256xf32>,
    } else {
    }
    %c0 = arith.constant 0 : index
    %c0_1 = arith.constant 0 : index
    %c0_2 = arith.constant 0 : index
    %3 = vector.load %arg2[%c0, %c0_1, %c0_2] : memref<1x128x128xbf16, #tpu.memory_space<vmem>>, vector<1x128x128xbf16>
    %4 = vector.shape_cast %3 : vector<1x128x128xbf16> to vector<128x128xbf16>
    %c0_3 = arith.constant 0 : index
    %c0_4 = arith.constant 0 : index
    %5 = vector.load %arg3[%c0_3, %c0_4] : memref<1x128xbf16, #tpu.memory_space<vmem>>, vector<1x128xbf16>
    %6 = vector.broadcast %5 : vector<1x128xbf16> to vector<128x128xbf16>
    %7 = arith.addf %4, %6 : vector<128x128xbf16>
    %cst = arith.constant 0.000000e+00 : bf16
    %8 = vector.broadcast %cst : bf16 to vector<128x128xbf16>
    %9 = arith.maximumf %7, %8 : vector<128x128xbf16>
    %c0_5 = arith.constant 0 : index
    %c0_6 = arith.constant 0 : index
    %10 = vector.load %arg4[%c0_5, %c0_6] : memref<128x256xbf16, #tpu.memory_space<vmem>>, vector<128x256xbf16>
    %cst_7 = arith.constant dense<0.000000e+00> : vector<128x256xf32>
    %11 = tpu.matmul %9, %10, %cst_7 {dimension_numbers = #tpu.dot_dimension_numbers<[1], [0], [0], [1], [0, 0, 1, 1], [], []>} : vector<128x128xbf16>, vector<128x256xbf16>, vector<128x256xf32> -> vector<128x256xf32>
    %c0_8 = arith.constant 0 : index
    %c0_9 = arith.constant 0 : index
    %12 = vector.load %arg5[%c0_8, %c0_9] : memref<1x256xf32, #tpu.memory_space<vmem>>, vector<1x256xf32>
    %13 = vector.broadcast %12 : vector<1x256xf32> to vector<128x256xf32>
    %14 = arith.addf %11, %13 : vector<128x256xf32>
    %cst_10 = arith.constant 0.000000e+00 : f32
    %15 = vector.broadcast %cst_10 : f32 to vector<128x256xf32>
    %16 = arith.maximumf %14, %15 : vector<128x256xf32>
    %c0_11 = arith.constant 0 : index
    %c0_12 = arith.constant 0 : index
    %17 = vector.load %arg11[%c0_11, %c0_12] : memref<1x256xf32, #tpu.memory_space<vmem>>, vector<1x256xf32>
    %cst_13 = arith.constant dense<0.000000e+00> : vector<256xf32>
    %18 = vector.multi_reduction <add>, %16, %cst_13 [0] : vector<128x256xf32> to vector<256xf32>
    %19 = vector.shape_cast %18 : vector<256xf32> to vector<1x256xf32>
    %20 = arith.addf %17, %19 : vector<1x256xf32>
    %c0_14 = arith.constant 0 : index
    %c0_15 = arith.constant 0 : index
    %21 = vector.load %arg11[%c0_14, %c0_15] : memref<1x256xf32, #tpu.memory_space<vmem>>, vector<1x256xf32>
    tpu.vector_store %arg11[%c0_14, %c0_15], %20 {strides = array<i32>} : memref<1x256xf32, #tpu.memory_space<vmem>>, vector<1x256xf32>,
    %c0_i32_16 = arith.constant 0 : i32
    %22 = arith.cmpi eq, %arg1, %c0_i32_16 : i32
    %23 = arith.extui %22 : i1 to i32
    %c0_i32_17 = arith.constant 0 : i32
    %24 = arith.cmpi ne, %23, %c0_i32_17 : i32
    scf.if %24 {
      %c0_18 = arith.constant 0 : index
      %c0_19 = arith.constant 0 : index
      %25 = vector.load %arg11[%c0_18, %c0_19] : memref<1x256xf32, #tpu.memory_space<vmem>>, vector<1x256xf32>
      %26 = vector.extract_strided_slice %25 {offsets = [0, 0], sizes = [1, 64], strides = [1, 1]} : vector<1x256xf32> to vector<1x64xf32>
      %27 = vector.extract_strided_slice %25 {offsets = [0, 64], sizes = [1, 64], strides = [1, 1]} : vector<1x256xf32> to vector<1x64xf32>
      %28 = arith.addf %26, %27 : vector<1x64xf32>
      %29 = vector.extract_strided_slice %25 {offsets = [0, 128], sizes = [1, 64], strides = [1, 1]} : vector<1x256xf32> to vector<1x64xf32>
      %30 = arith.addf %28, %29 : vector<1x64xf32>
      %31 = vector.extract_strided_slice %25 {offsets = [0, 192], sizes = [1, 64], strides = [1, 1]} : vector<1x256xf32> to vector<1x64xf32>
      %32 = arith.addf %30, %31 : vector<1x64xf32>
      %cst_20 = arith.constant 0.001953125 : f32
      %33 = vector.broadcast %cst_20 : f32 to vector<1x64xf32>
      %34 = arith.mulf %32, %33 : vector<1x64xf32>
      %c0_21 = arith.constant 0 : index
      %c0_22 = arith.constant 0 : index
      %35 = vector.load %arg6[%c0_21, %c0_22] : memref<64x64xf32, #tpu.memory_space<vmem>>, vector<64x64xf32>
      %cst_23 = arith.constant dense<0.000000e+00> : vector<1x64xf32>
      %36 = tpu.matmul %34, %35, %cst_23 {dimension_numbers = #tpu.dot_dimension_numbers<[1], [0], [0], [1], [0, 0, 1, 1], [], []>} : vector<1x64xf32>, vector<64x64xf32>, vector<1x64xf32> -> vector<1x64xf32>
      %c0_24 = arith.constant 0 : index
      %c0_25 = arith.constant 0 : index
      %37 = vector.load %arg7[%c0_24, %c0_25] : memref<1x64xf32, #tpu.memory_space<vmem>>, vector<1x64xf32>
      %38 = arith.addf %36, %37 : vector<1x64xf32>
      %cst_26 = arith.constant 0.000000e+00 : f32
      %39 = vector.broadcast %cst_26 : f32 to vector<1x64xf32>
      %40 = arith.maximumf %38, %39 : vector<1x64xf32>
      %c0_27 = arith.constant 0 : index
      %c0_28 = arith.constant 0 : index
      %41 = vector.load %arg8[%c0_27, %c0_28] : memref<64x32xf32, #tpu.memory_space<vmem>>, vector<64x32xf32>
      %cst_29 = arith.constant dense<0.000000e+00> : vector<1x32xf32>
      %42 = tpu.matmul %40, %41, %cst_29 {dimension_numbers = #tpu.dot_dimension_numbers<[1], [0], [0], [1], [0, 0, 1, 1], [], []>} : vector<1x64xf32>, vector<64x32xf32>, vector<1x32xf32> -> vector<1x32xf32>
      %c0_30 = arith.constant 0 : index
      %c0_31 = arith.constant 0 : index
      %43 = vector.load %arg9[%c0_30, %c0_31] : memref<1x32xf32, #tpu.memory_space<vmem>>, vector<1x32xf32>
      %44 = arith.addf %42, %43 : vector<1x32xf32>
      %45 = arith.mulf %44, %44 : vector<1x32xf32>
      %cst_32 = arith.constant dense<0.000000e+00> : vector<1xf32>
      %46 = vector.multi_reduction <add>, %45, %cst_32 [1] : vector<1x32xf32> to vector<1xf32>
      %47 = vector.shape_cast %46 : vector<1xf32> to vector<1x1xf32>
      %cst_33 = arith.constant 1.000000e-24 : f32
      %48 = vector.broadcast %cst_33 : f32 to vector<1x1xf32>
      %49 = arith.maximumf %47, %48 : vector<1x1xf32>
      %50 = math.rsqrt %49 : vector<1x1xf32>
      %51 = vector.broadcast %50 : vector<1x1xf32> to vector<1x32xf32>
      %52 = arith.mulf %44, %51 : vector<1x32xf32>
      %c0_34 = arith.constant 0 : index
      %c0_35 = arith.constant 0 : index
      %c0_36 = arith.constant 0 : index
      %53 = vector.load %arg10[%c0_34, %c0_35, %c0_36] : memref<1x1x32xf32, #tpu.memory_space<vmem>>, vector<1x1x32xf32>
      %54 = vector.shape_cast %53 : vector<1x1x32xf32> to vector<1x32xf32>
      %55 = vector.shape_cast %52 : vector<1x32xf32> to vector<1x1x32xf32>
      tpu.vector_store %arg10[%c0_34, %c0_35, %c0_36], %55 {strides = array<i32>} : memref<1x1x32xf32, #tpu.memory_space<vmem>>, vector<1x1x32xf32>,
    } else {
    }
    return
  }
  func.func @transform_0(%arg0: i32, %arg1: i32) -> (i32, i32, i32) {
    %c0_i32 = arith.constant 0 : i32
    %c0_i32_0 = arith.constant 0 : i32
    return %arg0, %arg1, %c0_i32 : i32, i32, i32
  }
  func.func @transform_1(%arg0: i32, %arg1: i32) -> (i32, i32) {
    %c0_i32 = arith.constant 0 : i32
    %c0_i32_0 = arith.constant 0 : i32
    %c0_i32_1 = arith.constant 0 : i32
    return %c0_i32, %c0_i32_0 : i32, i32
  }
  func.func @transform_2(%arg0: i32, %arg1: i32) -> (i32, i32) {
    %c0_i32 = arith.constant 0 : i32
    %c0_i32_0 = arith.constant 0 : i32
    %c0_i32_1 = arith.constant 0 : i32
    return %c0_i32, %c0_i32_0 : i32, i32
  }
  func.func @transform_3(%arg0: i32, %arg1: i32) -> (i32, i32) {
    %c0_i32 = arith.constant 0 : i32
    %c0_i32_0 = arith.constant 0 : i32
    %c0_i32_1 = arith.constant 0 : i32
    return %c0_i32, %c0_i32_0 : i32, i32
  }
  func.func @transform_4(%arg0: i32, %arg1: i32) -> (i32, i32) {
    %c0_i32 = arith.constant 0 : i32
    %c0_i32_0 = arith.constant 0 : i32
    %c0_i32_1 = arith.constant 0 : i32
    return %c0_i32, %c0_i32_0 : i32, i32
  }
  func.func @transform_5(%arg0: i32, %arg1: i32) -> (i32, i32) {
    %c0_i32 = arith.constant 0 : i32
    %c0_i32_0 = arith.constant 0 : i32
    %c0_i32_1 = arith.constant 0 : i32
    return %c0_i32, %c0_i32_0 : i32, i32
  }
  func.func @transform_6(%arg0: i32, %arg1: i32) -> (i32, i32) {
    %c0_i32 = arith.constant 0 : i32
    %c0_i32_0 = arith.constant 0 : i32
    %c0_i32_1 = arith.constant 0 : i32
    return %c0_i32, %c0_i32_0 : i32, i32
  }
  func.func @transform_7(%arg0: i32, %arg1: i32) -> (i32, i32) {
    %c0_i32 = arith.constant 0 : i32
    %c0_i32_0 = arith.constant 0 : i32
    %c0_i32_1 = arith.constant 0 : i32
    return %c0_i32, %c0_i32_0 : i32, i32
  }
  func.func @transform_8(%arg0: i32, %arg1: i32) -> (i32, i32, i32) {
    %c0_i32 = arith.constant 0 : i32
    %c0_i32_0 = arith.constant 0 : i32
    %c0_i32_1 = arith.constant 0 : i32
    return %arg0, %c0_i32, %c0_i32_0 : i32, i32, i32
  }
}

</mosaic_0001>

<bundles_post_ra>
// kernel: tpu_custom_call.1
= control target key start
LH: loop header
LB: loop body
LE: loop exit
PB: predicated region body
PF: predicated region fallthrough
CT: control target
= control target key end

     0   :  { %s1690_s0 = inlined_call_operand.hbm [shape: bf16[2,128,128], index: 0, kind: input, shape index: {}]   ;;  %s1691_s1 = inlined_call_operand.vmem [shape: bf16[1,128], index: 1, kind: input, shape index: {}]   ;;  %s1692_s2 = inlined_call_operand.hbm [shape: bf16[128,256], index: 2, kind: input, shape index: {}]   ;;  %s1693_s3 = inlined_call_operand.vmem [shape: f32[1,256], index: 3, kind: input, shape index: {}]   ;;  %s1694_s4 = inlined_call_operand.vmem [shape: f32[64,64], index: 4, kind: input, shape index: {}]   ;;  %s1695_s5 = inlined_call_operand.vmem [shape: f32[1,64], index: 5, kind: input, shape index: {}]   ;;  %s1696_s6 = inlined_call_operand.vmem [shape: f32[64,32], index: 6, kind: input, shape index: {}]   ;;  %s1697_s7 = inlined_call_operand.vmem [shape: f32[1,32], index: 7, kind: input, shape index: {}]   ;;  %s1698_s8 = inlined_call_operand.hbm [shape: f32[2,1,32], index: 8, kind: output, shape index: {}]  }
   0x1   :  { %1706 = sst [smem:[#allocation17_spill]] %s1692_s2 }
   0x2   :  { %13 = vsyncpa [#allocation4], 0 }
   0x3   :  { %15 = vsyncpa [#allocation4 + $0x1], 0 }
   0x4   :  { %16 = vsyncpa [#allocation7], 0 }
   0x5   :  { %17 = vsyncpa [#allocation5], 0 }
   0x6   :  { %19 = vsyncpa [#allocation5 + $0x1], 0  ;;  %s1397_s27 = smov 0   ;;  %s1399_s28 = smov 0  }
   0x7   :  { %s1401_s29 = smov 0   ;;  %s1403_s30 = smov 0  }
   0x8   :  { %s1405_s9 = smov 0   ;;  %s1407_s10 = smov 0  }
   0x9 LB: > { %1707 = sst [smem:[#allocation12_spill]] %s1323_s27  ;;  %s965_s11 = sadd.s32 4294967295, %s1343_s10   ;;  %s1343_s10 = sphi %s1407_s10, %s25_s10   ;;  %s1339_s9 = sphi %s1405_s9, %s1731_s9   ;;  %s1335_s30 = sphi %s1403_s30, %s1730_s30   ;;  %s1331_s29 = sphi %s1401_s29, %s1729_s29   ;;  %s1327_s28 = sphi %s1399_s28, %s1728_s28   ;;  %s1323_s27 = sphi %s1397_s27, %s1727_s27  }
   0xa   : > { %1708 = sst [smem:[#allocation13_spill]] %s1343_s10  ;;  %s966_s12 = sadd.s32 4294967294, %s1343_s10  }
   0xb   : > { %p59_p0 = scmp.ne.s32.totalorder %s1327_s28, %s1323_s27  ;;  %p1431_p1 = scmp.eq.s32.totalorder %s965_s11, 0 }
   0xc   : > { %p1435_p2 = scmp.eq.s32.totalorder %s965_s11, 1  ;;  %p236_p3 = scmp.eq.s32.totalorder %s966_s12, 1 }
   0xd   : > { %p1441_p4 = por %p1431_p1, %p59_p0  ;;  %p967_p5 = scmp.ge.s32.totalorder %s1343_s10, 1 }
   0xe   : > { %p1446_p6 = por %p236_p3, %p59_p0  ;;  %p243_p7 = scmp.lt.s32.totalorder %s1343_s10, 3 }
   0xf   : > { %s1714_s2 = sld [smem:[#allocation17_spill]]  ;;  %s1345_s21 = smov [#allocation6]  }
  0x10   : > { %s1712_s16 = scalar_select %p1446_p6, 1, 0 }
  0x11   : > { %p1454_p8 = pnand %p967_p5, %p243_p7  ;;  %s259_s22 = sshll.u32 %s1345_s21, 4  ;;  %s260_s22 = int_to_ptr.vmem [resolvable:$true] %s259_s22 }
  0x12   : > { %1713 = sst [smem:[#allocation14_spill]] %s1712_s16  ;;  %p969_p11 = scmp.ge.s32.totalorder %s1343_s10, 2 }
  0x13   : > { %p1124_p9 = pneg %p1454_p8  ;;  %s1346_s23 = smov 128  }
  0x14   : > { %s1347_s24 = smov 8   ;;  %s37_s25 = sadd.s32 1, %s1339_s9 }
  0x15   : > { %s257_s19 = sshll.u32 %s1714_s2, 4  ;;  %p1125_p10 = pnand %p1124_p9, %p1431_p1  ;;  %s258_s19 = int_to_ptr.hbm [resolvable:$true] %s257_s19 }
  0x16   : > { %p39_p12 = scmp.ge.s32.totalorder %s37_s25, 2  ;;  %s46_s26 = sadd.s32 1, %s1331_s29 }
  0x17   : > { %1127 = dma.hbm_to_vmem [thread:$0]  (!%p1125_p10), %s258_s19, 2048, %s260_s22, [#allocation7], %s1346_s23, %s1346_s23, %s1347_s24  }
  0x18   : > { %p53_p13 = scmp.ne.s32.totalorder %s1331_s29, %s1327_s28  ;;  %p54_p0 = scmp.eq.s32.totalorder %s1343_s10, 0 }
  0x19   : > { %s1733_s25 = smov (%p39_p12, %s37_s25), 0  ;;  %p1137_p7 = scmp.lt.s32.totalorder %s1343_s10, 2 }
  0x1a   : > { %1716 = sst [smem:[#allocation15_spill]] %s1733_s25  ;;  %p1470_p3 = por %p54_p0, %p53_p13 }
  0x1b   : > { %p1476_p5 = por %p1435_p2, %p53_p13  ;;  %s41_s17 = ssub.s32 %s1339_s9, %s1733_s25 }
  0x1c   : > { %p44_p9 = scmp.eq.s32.totalorder %s41_s17, 0  ;;  %s288_s18 = sand.u32 1, %s1331_s29  }
  0x1d   : > { %s1718_s12 = scalar_select %p1476_p5, 1, 0 }
  0x1e   : > { %s970_s19 = sshll.u32 %s288_s18, 6  ;;  %s1044_s22 = sshll.u32 %s1339_s9, 6 }
  0x1f   : > { %1719 = sst [smem:[#allocation16_spill]] %s1718_s12  ;;  %s299_s2 = scalar_lea.hbm %s1690_s0, %s1044_s22 }
  0x20   : > { %s1485_s21 = scalar_select %p44_p9, %s1331_s29, %s46_s26  }
  0x21   : > { %s292_s16 = scalar_lea.vmem [#allocation3], %s970_s19  ;;  %s300_s14 = sshll.u32 %s299_s2, 4  ;;  %s301_s14 = int_to_ptr.hbm [resolvable:$true] %s300_s14 }
  0x22   : > { %s302_s27 = sshll.u32 %s292_s16, 4  ;;  %p1129_p2 = pnand %p1137_p7, %p1470_p3  ;;  %s303_s27 = int_to_ptr.vmem [resolvable:$true] %s302_s27 }
  0x23   : > { %s289_s12 = scalar_lea.sflag [#allocation4], %s288_s18  ;;  %s1348_s25 = smov 64  }
  0x24   : > { %s1349_s10 = smov 4   ;;  %314 = sbr.rel (%p1454_p8) target bundleno = 857 (0x359), region = 52 }
  0x25   : > { %1131 = dma.hbm_to_vmem [thread:$0]  (!%p1129_p2), %s301_s14, 1024, %s303_s27, %s289_s12, %s1348_s25, %s1348_s25, %s1349_s10  }
  0x26   : > { %s1496_s26 = sand.u32 (!%p1454_p8), 1, %s1327_s28  }
  0x27   : > { %s974_s17 = sshll.u32 (!%p1454_p8), %s1496_s26, 6  ;;  %s317_s16 = scalar_lea.sflag (!%p1454_p8), [#allocation4], %s1496_s26 }
  0x28   : > { %s1500_s2 = scalar_lea.vmem (!%p1454_p8), [#allocation3], %s974_s17 }
  0x29   : > { %1310 = dma.done.wait (%p1441_p4), %s317_s16, 1024  }
  0x2a   : > { %1312 = vsyncadd (%p1441_p4), %s317_s16, 4294966272 }
  0x2b   : > { %1314 = dma.done.wait (%p1431_p1), [#allocation7], 2048  }
  0x2c   : > { %1316 = vsyncadd (%p1431_p1), [#allocation7], 4294965248  ;;  %v1034_v0 = vld [vmem:[#allocation6 + $0x70] sm:$0xf]  ;;  %v1060_v1 = vld [vmem:[#allocation6 + $0x74] sm:$0xf0]  ;;  %s874_s19 = scalar_lea.hbm %s1698_s8, %s1335_s30 }
  0x2d   : > { %v1059_v2 = vld [vmem:[#allocation6 + $0x74] sm:$0xf]  ;;  %v1035_v3 = vor.u32 %v1060_v1, %v1034_v0  ;;  %v1036_v4 = vld [vmem:[#allocation6 + $0x78] sm:$0xf0]  ;;  %v1026_v5 = vld [vmem:[#allocation6 + $0x60] sm:$0xf] }
  0x2e   : > { %v1058_v6 = vld [vmem:[#allocation6 + $0x64] sm:$0xf0]  ;;  %v1039_v7 = vor.u32 %v1059_v2, %v1036_v4  ;;  %v1057_v8 = vld [vmem:[#allocation6 + $0x64] sm:$0xf]  ;;  %v1028_v9 = vld [vmem:[#allocation6 + $0x68] sm:$0xf0] }
  0x2f   : > { %580 = vmatpush.bf16.msra.mxu0 %v1035_v3  ;;  %v1027_v10 = vor.u32 %v1058_v6, %v1026_v5  ;;  %1100 = vmatpush.bf16.msra.mxu2 %v1035_v3  ;;  %v1031_v11 = vor.u32 %v1057_v8, %v1028_v9  ;;  %v1018_v12 = vld [vmem:[#allocation6 + $0x50] sm:$0xf]  ;;  %v1056_v13 = vld [vmem:[#allocation6 + $0x54] sm:$0xf0]  ;;  %v1055_v14 = vld [vmem:[#allocation6 + $0x54] sm:$0xf] }
  0x30   : > { %629 = vmatpush.bf16.msra.mxu1 %v1039_v7  ;;  %1108 = vmatpush.bf16.msra.mxu3 %v1039_v7  ;;  %v1020_v15 = vld [vmem:[#allocation6 + $0x58] sm:$0xf0]  ;;  %v1019_v16 = vor.u32 %v1056_v13, %v1018_v12  ;;  %v1010_v18 = vld [vmem:[#allocation6 + $0x40] sm:$0xf]  ;;  %v1054_v19 = vld [vmem:[#allocation6 + $0x44] sm:$0xf0] }
  0x31   : > { %v1023_v17 = vor.u32 %v1055_v14, %v1020_v15  ;;  %v1053_v20 = vld [vmem:[#allocation6 + $0x44] sm:$0xf]  ;;  %v1012_v21 = vld [vmem:[#allocation6 + $0x48] sm:$0xf0]  ;;  %v1011_v22 = vor.u32 %v1054_v19, %v1010_v18  ;;  %v384_v23 = vld [vmem:[%s1691_s1] sm:$0x1] }
  0x32   : > { %v1015_v24 = vor.u32 %v1053_v20, %v1012_v21  ;;  %v1002_v25 = vld [vmem:[#allocation6 + $0x30] sm:$0xf]  ;;  %v1052_v26 = vld [vmem:[#allocation6 + $0x34] sm:$0xf0]  ;;  %v386_v27 = vpack.i.b16 %v384_v23, %v384_v23  ;;  %v1051_v28 = vld [vmem:[#allocation6 + $0x34] sm:$0xf] }
  0x33   : > { %581 = vmatpush.bf16.msra.mxu0 %v1027_v10  ;;  %1101 = vmatpush.bf16.msra.mxu2 %v1027_v10  ;;  %v1004_v29 = vld [vmem:[#allocation6 + $0x38] sm:$0xf0]  ;;  %v1062_v30 = vld [vmem:[%s1500_s2] sm:$0xff]   ;;  %v1003_v32 = vor.u32 %v1052_v26, %v1002_v25  ;;  %v1050_v36 = vld [vmem:[#allocation6 + $0x24] sm:$0xf0]  ;;  %vm756_vm1 = vcmask 1040384  }
  0x34   : > { %630 = vmatpush.bf16.msra.mxu1 %v1031_v11  ;;  %1109 = vmatpush.bf16.msra.mxu3 %v1031_v11  ;;  %v388_v31 = vperm.slane %v386_v27, 0  ;;  %v1096_v33 = vld [vmem:[%s1500_s2 + $0x20] sm:$0xff]   ;;  %v1007_v34 = vor.u32 %v1051_v28, %v1004_v29  ;;  %v996_v38 = vld [vmem:[#allocation6 + $0x28] sm:$0xf0]  ;;  %v1063_v39 = vunpack.c.l.bf16 %v1062_v30  ;;  %v1064_v40 = vunpack.c.h.bf16 %v1062_v30  ;;  %v986_v47 = vld [vmem:[#allocation6 + $0x10] sm:$0xf] }
  0x35   : > { %v994_v35 = vld [vmem:[#allocation6 + $0x20] sm:$0xf]  ;;  %v1049_v37 = vld [vmem:[#allocation6 + $0x24] sm:$0xf]  ;;  %v1079_v42 = vunpack.c.l.bf16 %v1096_v33  ;;  %v1080_v43 = vunpack.c.h.bf16 %v1096_v33  ;;  %v1097_v45 = vld [vmem:[%s1500_s2 + $0x28] sm:$0xff]   ;;  %s1351_s10 = smov 64  }
  0x36   : > { %v1515_v41 = vunpack.c.l.bf16 %v388_v31  ;;  %v995_v44 = vor.u32 %v1050_v36, %v994_v35  ;;  %v999_v46 = vor.u32 %v1049_v37, %v996_v38  ;;  %v1048_v48 = vld [vmem:[#allocation6 + $0x14] sm:$0xf0]  ;;  %v1047_v49 = vld [vmem:[#allocation6 + $0x14] sm:$0xf]  ;;  %v988_v50 = vld [vmem:[#allocation6 + $0x18] sm:$0xf0]  ;;  %v1083_v51 = vunpack.c.l.bf16 %v1097_v45 }
  0x37   : > { %582 = vmatpush.bf16.msra.mxu0 %v1019_v16  ;;  %1102 = vmatpush.bf16.msra.mxu2 %v1019_v16  ;;  %v1084_v52 = vunpack.c.h.bf16 %v1097_v45  ;;  %v987_v57 = vor.u32 %v1048_v48, %v986_v47  ;;  %v991_v58 = vor.u32 %v1047_v49, %v988_v50  ;;  %v978_v59 = vld [vmem:[#allocation6] sm:$0xf]  ;;  %v1046_v60 = vld [vmem:[#allocation6 + $0x4] sm:$0xf0]  ;;  %v1045_v61 = vld [vmem:[#allocation6 + $0x4] sm:$0xf] }
  0x38   : > { %631 = vmatpush.bf16.msra.mxu1 %v1023_v17  ;;  %1110 = vmatpush.bf16.msra.mxu3 %v1023_v17  ;;  %v406_v53 = vadd.f32 %v1063_v39, %v1515_v41  ;;  %v407_v54 = vadd.f32 %v1064_v40, %v1515_v41  ;;  %v414_v55 = vadd.f32 %v1079_v42, %v1515_v41  ;;  %v980_v62 = vld [vmem:[#allocation6 + $0x8] sm:$0xf0]  ;;  %v1098_v15 = vld [vmem:[%s1500_s2 + $0x30] sm:$0xff]   ;;  %v1099_v31 = vld [vmem:[%s1500_s2 + $0x38] sm:$0xff]   ;;  %vm790_vm2 = vcmask 523264   ;;  %s357_s23 = scalar_lea.vmem [#allocation8], %s1496_s26 }
  0x39   : > { %v415_v56 = vadd.f32 %v1080_v43, %v1515_v41  ;;  %v416_v63 = vadd.f32 %v1083_v51, %v1515_v41  ;;  %v417_v0 = vadd.f32 %v1084_v52, %v1515_v41  ;;  %v979_v5 = vor.u32 %v1046_v60, %v978_v59  ;;  %v1093_v11 = vld [vmem:[%s1500_s2 + $0x8] sm:$0xff]   ;;  %v1094_v27 = vld [vmem:[%s1500_s2 + $0x10] sm:$0xff]   ;;  %s876_s24 = sshll.u32 %s357_s23, 4  ;;  %s878_s14 = sshll.u32 %s874_s19, 4  ;;  %s877_s24 = int_to_ptr.vmem [resolvable:$true] %s876_s24  ;;  %s879_s14 = int_to_ptr.hbm [resolvable:$true] %s878_s14 }
  0x3a   : > { %v454_v1 = vmax.f32 %v406_v53, 0.0  ;;  %v455_v2 = vmax.f32 %v407_v54, 0.0  ;;  %v462_v3 = vmax.f32 %v414_v55, 0.0  ;;  %v983_v6 = vor.u32 %v1045_v61, %v980_v62  ;;  %s866_s17 = scalar_lea.sflag [#allocation5], %s1496_s26  ;;  %s1271_s16 = sshra.s32 %s879_s14, 4  ;;  %s1272_s16 = int_to_ptr.hbm [resolvable:$true] %s1271_s16 }
  0x3b   : > { %583 = vmatpush.bf16.msra.mxu0 %v1011_v22  ;;  %1103 = vmatpush.bf16.msra.mxu2 %v1011_v22  ;;  %v463_v4 = vmax.f32 %v415_v56, 0.0  ;;  %v464_v7 = vmax.f32 %v416_v63, 0.0  ;;  %v465_v8 = vmax.f32 %v417_v0, 0.0  ;;  %v1067_v13 = vunpack.c.l.bf16 %v1093_v11  ;;  %p1278_p10 = scmp.lt.s32.totalorder %s1272_s16, %s1698_s8 }
  0x3c   : > { %632 = vmatpush.bf16.msra.mxu1 %v1015_v24  ;;  %1111 = vmatpush.bf16.msra.mxu3 %v1015_v24  ;;  %v470_v9 = vpack.c.bf16 %v455_v2, %v454_v1  ;;  %v1068_v14 = vunpack.c.h.bf16 %v1093_v11  ;;  %v1087_v16 = vunpack.c.l.bf16 %v1098_v15  ;;  %v1088_v17 = vunpack.c.h.bf16 %v1098_v15 }
  0x3d   : > { %v474_v10 = vpack.c.bf16 %v463_v4, %v462_v3  ;;  %v475_v12 = vpack.c.bf16 %v465_v8, %v464_v7  ;;  %v408_v18 = vadd.f32 %v1067_v13, %v1515_v41  ;;  %v1071_v29 = vunpack.c.l.bf16 %v1094_v27  ;;  %v494_v3 = vld [vmem:[%s1693_s3] sm:$0x3] }
  0x3e   : > { %v409_v19 = vadd.f32 %v1068_v14, %v1515_v41  ;;  %v418_v20 = vadd.f32 %v1087_v16, %v1515_v41  ;;  %v419_v21 = vadd.f32 %v1088_v17, %v1515_v41  ;;  %v1072_v30 = vunpack.c.h.bf16 %v1094_v27 }
  0x3f   : > { %584 = vmatpush.bf16.msra.mxu0 %v1003_v32  ;;  %1104 = vmatpush.bf16.msra.mxu2 %v1003_v32  ;;  %v456_v22 = vmax.f32 %v408_v18, 0.0  ;;  %v1091_v32 = vunpack.c.l.bf16 %v1099_v31  ;;  %v1092_v33 = vunpack.c.h.bf16 %v1099_v31  ;;  %v1544_v4 = vperm.slane %v494_v3, 0 }
  0x40   : > { %633 = vmatpush.bf16.msra.mxu1 %v1007_v34  ;;  %1112 = vmatpush.bf16.msra.mxu3 %v1007_v34  ;;  %v457_v23 = vmax.f32 %v409_v19, 0.0  ;;  %v466_v24 = vmax.f32 %v418_v20, 0.0  ;;  %v467_v25 = vmax.f32 %v419_v21, 0.0  ;;  %v410_v34 = vadd.f32 %v1071_v29, %v1515_v41 }
  0x41   : > { %v411_v35 = vadd.f32 %v1072_v30, %v1515_v41  ;;  %v420_v36 = vadd.f32 %v1091_v32, %v1515_v41  ;;  %v421_v37 = vadd.f32 %v1092_v33, %v1515_v41  ;;  %v1557_v27 = vperm.slane %v494_v3, 1 }
  0x42   : > { %v471_v26 = vpack.c.bf16 %v457_v23, %v456_v22  ;;  %v476_v28 = vpack.c.bf16 %v467_v25, %v466_v24  ;;  %v458_v38 = vmax.f32 %v410_v34, 0.0  ;;  %vm848_vm3 = vcmask 253952  }
  0x43   : > { %585 = vmatpush.bf16.msra.mxu0 %v995_v44  ;;  %1105 = vmatpush.bf16.msra.mxu2 %v995_v44  ;;  %v459_v39 = vmax.f32 %v411_v35, 0.0  ;;  %v468_v40 = vmax.f32 %v420_v36, 0.0  ;;  %v469_v42 = vmax.f32 %v421_v37, 0.0  ;;  %v1095_v44 = vld [vmem:[%s1500_s2 + $0x18] sm:$0xff]   ;;  %s1273_s2 = scalar_lea.hbm %s1272_s16, 1 }
  0x44   : > { %634 = vmatpush.bf16.msra.mxu1 %v999_v46  ;;  %1113 = vmatpush.bf16.msra.mxu3 %v999_v46  ;;  %v1075_v46 = vunpack.c.l.bf16 %v1095_v44  ;;  %v1076_v47 = vunpack.c.h.bf16 %v1095_v44  ;;  %p1274_p1 = scmp.ne.s32.totalorder %s1272_s16, %s1273_s2 }
  0x45   : > { %v472_v43 = vpack.c.bf16 %v459_v39, %v458_v38  ;;  %v477_v45 = vpack.c.bf16 %v469_v42, %v468_v40  ;;  %v363_v40 = vlaneseq }
  0x46   : > { %v412_v48 = vadd.f32 %v1075_v46, %v1515_v41  ;;  %v413_v49 = vadd.f32 %v1076_v47, %v1515_v41  ;;  %p1275_p4 = pnand %p1274_p1, %p1476_p5 }
  0x47   : > { %586 = vmatpush.bf16.msra.mxu0 %v987_v57  ;;  %1106 = vmatpush.bf16.msra.mxu2 %v987_v57  ;;  %vm1566_vm0 = vcmp.lt.s32.totalorder %v363_v40, 256 }
  0x48   : > { %635 = vmatpush.bf16.msra.mxu1 %v991_v58  ;;  %1114 = vmatpush.bf16.msra.mxu3 %v991_v58  ;;  %v460_v50 = vmax.f32 %v412_v48, 0.0  ;;  %v461_v51 = vmax.f32 %v413_v49, 0.0  ;;  %v820_v48 = vld [vmem:[%s1696_s6 + $0x28] sm:$0xff]  ;;  %p1276_p8 = pneg %p1275_p4 }
  0x4a   : > { %v473_v52 = vpack.c.bf16 %v461_v51, %v460_v50 }
  0x4b   : > { %587 = vmatpush.bf16.msra.mxu0 %v979_v5  ;;  %1107 = vmatpush.bf16.msra.mxu2 %v979_v5 }
  0x4c   : > { %636 = vmatpush.bf16.msra.mxu1 %v983_v6  ;;  %1115 = vmatpush.bf16.msra.mxu3 %v983_v6 }
  0x4e   : > { %588 = vmatmul.bf16.vlgmr.msra.gmra.mxu0 %v470_v9  ;;  %608 = vmatmul.bf16.vlgmr.msra.gmra.mxu2 %v474_v10 }
  0x4f   : > { %637 = vmatmul.bf16.vlgmr.msra.gmra.mxu1 %v470_v9  ;;  %662 = vmatmul.bf16.vlgmr.msra.gmra.mxu3 %v475_v12 }
  0x5e   : > { %593 = vmatmul.bf16.gmra.mxu0 %v471_v26  ;;  %613 = vmatmul.bf16.gmra.mxu2 %v475_v12 }
  0x5f   : > { %642 = vmatmul.bf16.gmra.mxu1 %v471_v26  ;;  %667 = vmatmul.bf16.gmra.mxu3 %v476_v28 }
  0x6e   : > { %598 = vmatmul.bf16.gmra.mxu0 %v472_v43  ;;  %618 = vmatmul.bf16.gmra.mxu2 %v476_v28 }
  0x6f   : > { %647 = vmatmul.bf16.gmra.mxu1 %v472_v43  ;;  %672 = vmatmul.bf16.gmra.mxu3 %v477_v45 }
  0x7e   : > { %603 = vmatmul.bf16.gmra.mxu0 %v473_v52  ;;  %623 = vmatmul.bf16.gmra.mxu2 %v477_v45 }
  0x7f   : > { %652 = vmatmul.bf16.gmra.mxu1 %v473_v52  ;;  %v1350_v52 = vmov 0.0  }
  0x80   : > { %367 = vst.msk [vmem:[#allocation2] sm:$0x3] %vm1566_vm0, %v1350_v52 }
  0x8f   : > { %657 = vmatmul.bf16.gmra.mxu1 %v474_v10 }
  0xcb   : > { %v589_v53 = vpop.f32.mrf.mxu0 }
  0xcc   : > { %v638_v54 = vpop.f32.mrf.mxu1  ;;  %v590_v5 = vadd.f32 %v589_v53, %v1544_v4 }
  0xcd   : > { %v639_v33 = vadd.f32 %v638_v54, %v1557_v27 }
  0xce   : > { %v678_v11 = vmax.f32 %v590_v5, 0.0 }
  0xcf   : > { %v679_v49 = vmax.f32 %v639_v33, 0.0 }
  0xd1   : > { %v609_v55 = vpop.f32.mrf.mxu2 }
  0xd2   : > { %v1539_v41 = vpop.f32.mrf.mxu3  ;;  %v610_v34 = vadd.f32 %v609_v55, %v1544_v4 }
  0xd3   : > { %v591_v56 = vpop.f32.mrf.mxu0 }
  0xd4   : > { %v640_v57 = vpop.f32.mrf.mxu1  ;;  %v592_v6 = vadd.f32 %v591_v56, %v1544_v4  ;;  %v694_v53 = vmax.f32 %v610_v34, 0.0  ;;  %v664_v34 = vadd.f32 %v1539_v41, %v1557_v27 }
  0xd5   : > { %v641_v30 = vadd.f32 %v640_v57, %v1557_v27 }
  0xd6   : > { %v680_v12 = vmax.f32 %v592_v6, 0.0 }
  0xd7   : > { %v681_v42 = vmax.f32 %v641_v30, 0.0 }
  0xd8   : > { %v711_v15 = vadd.f32 %v680_v12, %v678_v11 }
  0xd9   : > { %v611_v58 = vpop.f32.mrf.mxu2  ;;  %v732_v57 = vadd.f32 %v681_v42, %v679_v49 }
  0xda   : > { %v1548_v10 = vpop.f32.mrf.mxu3  ;;  %v612_v44 = vadd.f32 %v611_v58, %v1544_v4 }
  0xdb   : > { %v594_v59 = vpop.f32.mrf.mxu0 }
  0xdc   : > { %v643_v60 = vpop.f32.mrf.mxu1  ;;  %v595_v13 = vadd.f32 %v594_v59, %v1544_v4 }
  0xdd   : > { %v644_v35 = vadd.f32 %v643_v60, %v1557_v27  ;;  %v696_v60 = vmax.f32 %v612_v44, 0.0 }
  0xde   : > { %v682_v16 = vmax.f32 %v595_v13, 0.0 }
  0xdf   : > { %v683_v50 = vmax.f32 %v644_v35, 0.0 }
  0xe0   : > { %v712_v23 = vadd.f32 %v711_v15, %v682_v16 }
  0xe1   : > { %v614_v61 = vpop.f32.mrf.mxu2 }
  0xe2   : > { %v1555_v26 = vpop.f32.mrf.mxu3  ;;  %v615_v54 = vadd.f32 %v614_v61, %v1544_v4 }
  0xe3   : > { %v596_v62 = vpop.f32.mrf.mxu0  ;;  %v669_v44 = vadd.f32 %v1555_v26, %v1557_v27  ;;  %v788_v26 = vld [vmem:[%s1694_s4 + $0x38] sm:$0xff] }
  0xe4   : > { %v645_v63 = vpop.f32.mrf.mxu1  ;;  %v597_v14 = vadd.f32 %v596_v62, %v1544_v4  ;;  %v698_v5 = vmax.f32 %v615_v54, 0.0  ;;  %802 = vmatpush.msrb.mxu2 %v788_v26 }
  0xe5   : > { %v646_v43 = vadd.f32 %v645_v63, %v1557_v27 }
  0xe6   : > { %v684_v19 = vmax.f32 %v597_v14, 0.0 }
  0xe7   : > { %v685_v58 = vmax.f32 %v646_v43, 0.0  ;;  %v699_v43 = vmax.f32 %v664_v34, 0.0 }
  0xe8   : > { %v713_v28 = vadd.f32 %v712_v23, %v684_v19 }
  0xe9   : > { %v616_v0 = vpop.f32.mrf.mxu2 }
  0xea   : > { %v670_v56 = vpop.f32.mrf.mxu3  ;;  %v617_v62 = vadd.f32 %v616_v0, %v1544_v4 }
  0xeb   : > { %v599_v1 = vpop.f32.mrf.mxu0 }
  0xec   : > { %v648_v2 = vpop.f32.mrf.mxu1  ;;  %v600_v17 = vadd.f32 %v599_v1, %v1544_v4  ;;  %v733_v1 = vadd.f32 %v732_v57, %v683_v50  ;;  %v700_v14 = vmax.f32 %v617_v62, 0.0  ;;  %v703_v50 = vmax.f32 %v669_v44, 0.0 }
  0xed   : > { %v649_v51 = vadd.f32 %v648_v2, %v1557_v27 }
  0xee   : > { %v686_v24 = vmax.f32 %v600_v17, 0.0  ;;  %v734_v61 = vadd.f32 %v733_v1, %v685_v58 }
  0xef   : > { %v687_v3 = vmax.f32 %v649_v51, 0.0 }
  0xf0   : > { %v714_v31 = vadd.f32 %v713_v28, %v686_v24 }
  0xf1   : > { %v619_v7 = vpop.f32.mrf.mxu2  ;;  %v735_v16 = vadd.f32 %v734_v61, %v687_v3  ;;  %v784_v3 = vld [vmem:[%s1694_s4 + $0x18] sm:$0xff] }
  0xf2   : > { %v620_v6 = vadd.f32 %v619_v7, %v1544_v4  ;;  %v673_v28 = vpop.f32.mrf.mxu3 }
  0xf3   : > { %v601_v8 = vpop.f32.mrf.mxu0  ;;  %v674_v51 = vadd.f32 %v673_v28, %v1557_v27  ;;  %v817_v28 = vld [vmem:[%s1696_s6 + $0x10] sm:$0xff] }
  0xf4   : > { %v650_v9 = vpop.f32.mrf.mxu1  ;;  %v602_v20 = vadd.f32 %v601_v8, %v1544_v4  ;;  %v702_v19 = vmax.f32 %v620_v6, 0.0  ;;  %v783_v6 = vld [vmem:[%s1694_s4 + $0x10] sm:$0xff] }
  0xf5   : > { %v651_v59 = vadd.f32 %v650_v9, %v1557_v27  ;;  %v707_v57 = vmax.f32 %v674_v51, 0.0 }
  0xf6   : > { %v688_v29 = vmax.f32 %v602_v20, 0.0 }
  0xf7   : > { %v689_v12 = vmax.f32 %v651_v59, 0.0  ;;  %v786_v59 = vld [vmem:[%s1694_s4 + $0x28] sm:$0xff] }
  0xf8   : > { %v715_v37 = vadd.f32 %v714_v31, %v688_v29 }
  0xf9   : > { %v621_v22 = vpop.f32.mrf.mxu2  ;;  %v736_v7 = vadd.f32 %v735_v16, %v689_v12 }
  0xfa   : > { %v622_v9 = vadd.f32 %v621_v22, %v1544_v4  ;;  %v675_v49 = vpop.f32.mrf.mxu3 }
  0xfb   : > { %v604_v18 = vpop.f32.mrf.mxu0  ;;  %v676_v54 = vadd.f32 %v675_v49, %v1557_v27 }
  0xfc   : > { %v653_v21 = vpop.f32.mrf.mxu1  ;;  %v605_v25 = vadd.f32 %v604_v18, %v1544_v4  ;;  %v704_v24 = vmax.f32 %v622_v9, 0.0 }
  0xfd   : > { %v654_v2 = vadd.f32 %v653_v21, %v1557_v27  ;;  %v709_v62 = vmax.f32 %v676_v54, 0.0 }
  0xfe   : > { %v690_v32 = vmax.f32 %v605_v25, 0.0 }
  0xff   : > { %v691_v0 = vmax.f32 %v654_v2, 0.0 }
 0x100   : > { %v716_v45 = vadd.f32 %v715_v37, %v690_v32  ;;  %v666_v37 = vadd.f32 %v1548_v10, %v1557_v27 }
 0x101   : > { %v624_v47 = vpop.f32.mrf.mxu2  ;;  %v737_v29 = vadd.f32 %v736_v7, %v691_v0  ;;  %v710_v0 = vld [vmem:[#allocation2] sm:$0x3]  ;;  %v822_v7 = vld [vmem:[%s1696_s6 + $0x38] sm:$0xff] }
 0x102   : > { %v625_v17 = vadd.f32 %v624_v47, %v1544_v4  ;;  %835 = vmatpush.msrb.mxu3 %v822_v7 }
 0x103   : > { %v606_v36 = vpop.f32.mrf.mxu0 }
 0x104   : > { %v607_v38 = vadd.f32 %v606_v36, %v1544_v4  ;;  %v655_v39 = vpop.f32.mrf.mxu1  ;;  %v706_v30 = vmax.f32 %v625_v17, 0.0 }
 0x105   : > { %v656_v13 = vadd.f32 %v655_v39, %v1557_v27 }
 0x106   : > { %v692_v46 = vmax.f32 %v607_v38, 0.0 }
 0x107   : > { %v693_v23 = vmax.f32 %v656_v13, 0.0 }
 0x108   : > { %v717_v55 = vadd.f32 %v716_v45, %v692_v46  ;;  %v701_v45 = vmax.f32 %v666_v37, 0.0  ;;  %v671_v46 = vadd.f32 %v670_v56, %v1557_v27  ;;  %v787_v56 = vld [vmem:[%s1694_s4 + $0x30] sm:$0xff]  ;;  %v789_v37 = vld [vmem:[%s1695_s5] sm:$0x1] }
 0x109   : > { %v626_v21 = vpop.f32.mrf.mxu2  ;;  %v738_v35 = vadd.f32 %v737_v29, %v693_v23  ;;  %803 = vmatpush.msrb.mxu2 %v787_v56  ;;  %v821_v23 = vld [vmem:[%s1696_s6 + $0x30] sm:$0xff]  ;;  %v816_v29 = vld [vmem:[%s1696_s6 + $0x8] sm:$0xff] }
 0x10a   : > { %v718_v63 = vadd.f32 %v717_v55, %v694_v53  ;;  %v627_v22 = vadd.f32 %v626_v21, %v1544_v4  ;;  %v705_v10 = vmax.f32 %v671_v46, 0.0  ;;  %v781_v21 = vld [vmem:[%s1694_s4] sm:$0xff]  ;;  %836 = vmatpush.msrb.mxu3 %v821_v23 }
 0x10b   : > { %804 = vmatpush.msrb.mxu2 %v786_v59 }
 0x10c   : > { %v719_v8 = vadd.f32 %v718_v63, %v696_v60  ;;  %v658_v11 = vpop.f32.mrf.mxu1  ;;  %v708_v40 = vmax.f32 %v627_v22, 0.0  ;;  %837 = vmatpush.msrb.mxu3 %v820_v48 }
 0x10d   : > { %v659_v18 = vadd.f32 %v658_v11, %v1557_v27  ;;  %v782_v11 = vld [vmem:[%s1694_s4 + $0x8] sm:$0xff] }
 0x10e   : > { %v720_v15 = vadd.f32 %v719_v8, %v698_v5 }
 0x10f   : > { %v695_v31 = vmax.f32 %v659_v18, 0.0 }
 0x110   : > { %v721_v20 = vadd.f32 %v720_v15, %v700_v14 }
 0x111   : > { %v739_v39 = vadd.f32 %v738_v35, %v695_v31 }
 0x112   : > { %v722_v25 = vadd.f32 %v721_v20, %v702_v19 }
 0x114   : > { %v723_v32 = vadd.f32 %v722_v25, %v704_v24  ;;  %v660_v33 = vpop.f32.mrf.mxu1  ;;  %v819_v24 = vld [vmem:[%s1696_s6 + $0x20] sm:$0xff]  ;;  %v818_v25 = vld [vmem:[%s1696_s6 + $0x18] sm:$0xff] }
 0x115   : > { %v661_v36 = vadd.f32 %v660_v33, %v1557_v27  ;;  %v785_v27 = vld [vmem:[%s1694_s4 + $0x20] sm:$0xff]  ;;  %838 = vmatpush.msrb.mxu3 %v819_v24 }
 0x116   : > { %v724_v38 = vadd.f32 %v723_v32, %v706_v30  ;;  %805 = vmatpush.msrb.mxu2 %v785_v27  ;;  %v815_v30 = vld [vmem:[%s1696_s6] sm:$0xff] }
 0x117   : > { %v697_v42 = vmax.f32 %v661_v36, 0.0  ;;  %839 = vmatpush.msrb.mxu3 %v818_v25 }
 0x118   : > { %v725_v47 = vadd.f32 %v724_v38, %v708_v40  ;;  %806 = vmatpush.msrb.mxu2 %v784_v3 }
 0x119   : > { %v740_v4 = vadd.f32 %v739_v39, %v697_v42  ;;  %840 = vmatpush.msrb.mxu3 %v817_v28  ;;  %v823_v42 = vld [vmem:[%s1697_s7] sm:$0x1] }
 0x11a   : > { %v726_v53 = vrot.slane %v725_v47, 4  ;;  %807 = vmatpush.msrb.mxu2 %v783_v6 }
 0x11b   : > { %v741_v41 = vadd.f32 %v740_v4, %v699_v43  ;;  %841 = vmatpush.msrb.mxu3 %v816_v29 }
 0x11c   : > { %v727_v60 = vadd.f32 %v726_v53, %v725_v47  ;;  %808 = vmatpush.msrb.mxu2 %v782_v11 }
 0x11d   : > { %v742_v52 = vadd.f32 %v741_v41, %v701_v45  ;;  %842 = vmatpush.msrb.mxu3 %v815_v30 }
 0x11e   : > { %v728_v2 = vrot.slane %v727_v60, 2  ;;  %809 = vmatpush.msrb.mxu2 %v781_v21 }
 0x11f   : > { %v743_v55 = vadd.f32 %v742_v52, %v703_v50 }
 0x120   : > { %v729_v61 = vadd.f32 %v728_v2, %v727_v60 }
 0x121   : > { %v744_v58 = vadd.f32 %v743_v55, %v705_v10 }
 0x122   : > { %v730_v14 = vrot.slane %v729_v61, 1 }
 0x123   : > { %v745_v63 = vadd.f32 %v744_v58, %v707_v57 }
 0x124   : > { %v731_v16 = vadd.f32 %v730_v14, %v729_v61 }
 0x125   : > { %v746_v1 = vadd.f32 %v745_v63, %v709_v62 }
 0x127   : > { %v747_v5 = vrot.slane %v746_v1, 4 }
 0x129   : > { %v748_v8 = vadd.f32 %v747_v5, %v746_v1 }
 0x12b   : > { %v749_v12 = vrot.slane %v748_v8, 2 }
 0x12d   : > { %v750_v13 = vadd.f32 %v749_v12, %v748_v8 }
 0x12f   : > { %v751_v9 = vrot.slane %v750_v13, 1 }
 0x131   : > { %v752_v15 = vadd.f32 %v751_v9, %v750_v13 }
 0x133   : > { %v755_v17 = vrot.slane %v752_v15, 7 }
 0x135   : > { %v757_v18 = vsel %vm756_vm1, %v731_v16, %v755_v17 }
 0x136   : > { %v759_v19 = vadd.f32 %v757_v18, %v710_v0 }
 0x138   : > { %764 = vst.msk [vmem:[#allocation2] sm:$0x3] %vm1566_vm0, %v759_v19 }
 0x13f   : > { %v768_v20 = vld [vmem:[#allocation2] sm:$0x3] }
 0x140   : > { %770 = vrot.lane.b32.xlu0 %v768_v20, %s1351_s10  ;;  %v774_v22 = vrot.slane %v768_v20, 1  ;;  %s1277_s10 = scalar_lea.hbm %s1698_s8, 2 }
 0x141   : > { %p1279_p12 = scmp.lt.s32.totalorder %s1277_s10, %s1273_s2 }
 0x143   : > { %p1280_p13 = por %p1279_p12, %p1278_p10 }
 0x145   : > { %p1281_p0 = pnand %p1280_p13, %p1276_p8 }
 0x1b2   : > { %v771_v31 = vpop.permute.xlu0 %770 }
 0x1b3   : > { %v773_v32 = vadd.f32 %v771_v31, %v768_v20  ;;  %v777_v34 = vrot.slane %v771_v31, 1 }
 0x1b5   : > { %v776_v33 = vadd.f32 %v774_v22, %v773_v32 }
 0x1b7   : > { %v779_v35 = vadd.f32 %v777_v34, %v776_v33 }
 0x1b9   : > { %v780_v36 = vmul.f32 0.001953125, %v779_v35 }
 0x1bb   : > { %1040 = vmatmul.msk.f32.vlgmr.msrb.gmra.mxu2 %vm790_vm2, %v780_v36 }
 0x23e   : > { %v811_v38 = vpop.f32.mrf.mxu2 }
 0x23f   : > { %v812_v39 = vadd.f32 %v811_v38, %v789_v37 }
 0x241   : > { %v814_v40 = vmax.f32 %v812_v39, 0.0 }
 0x243   : > { %1041 = vmatmul.msk.f32.vlgmr.msrb.gmra.mxu3 %vm790_vm2, %v814_v40 }
 0x2c6   : > { %v844_v43 = vpop.f32.mrf.mxu3 }
 0x2c7   : > { %v845_v44 = vadd.f32 %v844_v43, %v823_v42 }
 0x2c9   : > { %v847_v4 = vmul.f32 %v845_v44, %v845_v44 }
 0x2cb   : > { %v849_v45 = vsel %vm848_vm3, %v847_v4, 0.0 }
 0x2cc   : > { %850 = vadd.xlane.f32.xlu0 %v849_v45 }
 0x33f   : > { %v851_v46 = vpop.xlane.xlu0 %850 }
 0x340   : > { %v852_v47 = vmax.f32 %v851_v46, 1e-24 }
 0x342   : > { %1195 = vrsqrt.f32 %v852_v47  ;;  %vm859_vm5 = vweird.f32 %v852_v47 }
 0x348   : > { %v1196_v41 = vpop.eup %1195 }
 0x349   : > { %v854_v49 = vmul.f32 %v1196_v41, %v852_v47  ;;  %vm860_vm4 = vweird.f32 %v1196_v41 }
 0x34a   : > { %vm861_vm6 = vmor %vm859_vm5, %vm860_vm4 }
 0x34b   : > { %v855_v50 = vmul.f32 %v1196_v41, %v854_v49 }
 0x34d   : > { %v856_v51 = vmul.f32 0.5, %v855_v50 }
 0x34f   : > { %v857_v52 = vsub.f32 1.5, %v856_v51 }
 0x351   : > { %v858_v10 = vmul.f32 %v1196_v41, %v857_v52 }
 0x353   : > { %v862_v53 = vsel %vm861_vm6, %v1196_v41, %v858_v10 }
 0x354   : > { %v863_v54 = vmul.f32 %v862_v53, %v845_v44 }
 0x356   : > { %864 = vst.msk [vmem:[%s357_s23] sm:$0x1] %vm848_vm3, %v863_v54 }
 0x357   : > { %1284 = shalt.err (!%p1281_p0)
}
 0x358   : > { %1122 = dma.vmem_to_hbm [thread:$0]  (%p1476_p5), %s877_s24, 16, %s879_s14, %s866_s17  }
 0x359 PF: > { %s1723_s26 = sld [smem:[#allocation12_spill]]  ;;  %p1133_p3 = pnand %p969_p11, %p1446_p6 }
 0x35a   : > { %s1725_s25 = sld [smem:[#allocation13_spill]] }
 0x35b   : > { %p1134_p7 = pneg %p1133_p3 }
 0x35f   : > { %s890_s11 = sand.u32 1, %s1723_s26  }
 0x360   : > { %s891_s12 = scalar_lea.sflag [#allocation5], %s890_s11 }
 0x361   : > { %1318 = dma.done.wait (%p1134_p7), %s891_s12, 16  }
 0x362   : > { %1320 = vsyncadd (%p1134_p7), %s891_s12, 4294967280  ;;  %s25_s10 = sadd.s32 1, %s1725_s25   ;;  %s1726_s18 = sld [smem:[#allocation15_spill]] }
 0x363   : > { %p22_p9 = scmp.ge.s32.totalorder %s25_s10, 4   ;;  %s1727_s27 = smov %s1327_s28 }
 0x364   : > { %s1728_s28 = smov %s1331_s29  ;;  %s1729_s29 = smov %s1485_s21 }
 0x365   : > { %s1730_s30 = smov %s1339_s9  ;;  %24 = sbr.rel (!%p22_p9) target bundleno = 9 (0x9), region = 109 }
 0x368   : > { %s1731_s9 = smov %s1726_s18 }
 0x36a   :  { %896 = vsyncpa [#allocation4], 1 }
 0x36b   :  { %898 = vsyncpa [#allocation4 + $0x1], 1 }
 0x36c   :  { %899 = vsyncpa [#allocation7], 1 }
 0x36d   :  { %900 = vsyncpa [#allocation5], 1 }
 0x36e   :  { %902 = vsyncpa [#allocation5 + $0x1], 1 }

</bundles_post_ra>
